<compile_context>
chip_gen: v7x
topology: tpu7x:2x2x1
jax: 0.10.0
libtpu: 0.0.40
codegen_flags: <defaults>
</compile_context>

<pallas_src>
import functools

import jax
import jax.numpy as jnp
from jax.experimental import pallas as pl
from jax.experimental.pallas import tpu as pltpu


def swiglu_kernel(x_ref, w1_ref, b1_ref, w2_ref, b2_ref, w3_ref, b3_ref,
                  o_ref, acc_ref):
    j = pl.program_id(1)

    @pl.when(j == 0)
    def _():
        acc_ref[...] = jnp.zeros_like(acc_ref)

    x = x_ref[...]                                                    # (tm, D_in)
    # Gate / value projections for this H tile, f32 accumulation on the MXU.
    h1 = jnp.dot(x, w1_ref[...], preferred_element_type=jnp.float32) + b1_ref[...]
    h2 = jnp.dot(x, w2_ref[...], preferred_element_type=jnp.float32) + b2_ref[...]
    # SiLU(h1) * h2  (VPU + EUP, hidden under the MXU once tm is large).
    hidden = (h1 * jax.nn.sigmoid(h1)) * h2                           # (tm, th)
    # ffn_ln is Identity (subln=False); Dropout(p=0.0) is Identity.
    acc_ref[...] += jnp.dot(hidden.astype(w3_ref.dtype), w3_ref[...],
                            preferred_element_type=jnp.float32)       # (tm, D_out)

    @pl.when(j == pl.num_programs(1) - 1)
    def _():
        o_ref[...] = (acc_ref[...] + b3_ref[...]).astype(o_ref.dtype)


def _round_up(a, b):
    return (a + b - 1) // b * b


def _pad2(a, rows, cols):
    r, c = a.shape
    if r == rows and c == cols:
        return a
    return jnp.pad(a, ((0, rows - r), (0, cols - c)))


@functools.partial(jax.jit, static_argnames=("tm", "th", "compute_dtype",
                                             "vmem_limit_bytes"))
def swiglu_pallas(x, w1, b1, w2, b2, w3, b3, *, tm=256, th=512,
                  compute_dtype=None, vmem_limit_bytes=64 * 1024 * 1024):
    """x: (B, N, D_in); w1/w2: (D_in, H); w3: (H, D_out); biases (1, H)/(1, D_out).

    Weights are the transposed nn.Linear weights (in_features first).
    """
    B, N, D_in = x.shape
    H = w1.shape[1]
    D_out = w3.shape[1]
    out_dtype = x.dtype

    if compute_dtype is not None:
        # bf16 recommended on v6e/v7x; biases stay f32 (added to f32 accumulators).
        x = x.astype(compute_dtype)
        w1 = w1.astype(compute_dtype)
        w2 = w2.astype(compute_dtype)
        w3 = w3.astype(compute_dtype)

    M = B * N
    x2d = x.reshape(M, D_in)

    # Pad feature dims to full 128-lane multiples (lane-dense vregs / stores).
    d_in_p = _round_up(D_in, 128)
    d_out_p = _round_up(D_out, 128)
    h_p = _round_up(H, 128)

    # Row tile: use tm if there is enough work, else a single 8-aligned tile.
    tm_eff = tm if M >= tm else _round_up(M, 8)
    m_p = _round_up(M, tm_eff)

    # Hidden tile: multiple of 128 that divides the (possibly re-padded) H.
    th_eff = min(th, h_p)
    h_p = _round_up(h_p, th_eff)

    x2d_p = _pad2(x2d, m_p, d_in_p)
    w1_p = _pad2(w1, d_in_p, h_p)
    w2_p = _pad2(w2, d_in_p, h_p)
    w3_p = _pad2(w3, h_p, d_out_p)
    b1_p = _pad2(b1, 1, h_p)
    b2_p = _pad2(b2, 1, h_p)
    b3_p = _pad2(b3, 1, d_out_p)

    grid = (m_p // tm_eff, h_p // th_eff)

    out2d = pl.pallas_call(
        swiglu_kernel,
        out_shape=jax.ShapeDtypeStruct((m_p, d_out_p), out_dtype),
        grid_spec=pltpu.PrefetchScalarGridSpec(
            num_scalar_prefetch=0,
            grid=grid,
            in_specs=[
                pl.BlockSpec((tm_eff, d_in_p), lambda i, j: (i, 0)),   # x row tile
                pl.BlockSpec((d_in_p, th_eff), lambda i, j: (0, j)),   # W1 H-slab
                pl.BlockSpec((1, th_eff), lambda i, j: (0, j)),        # b1 slice
                pl.BlockSpec((d_in_p, th_eff), lambda i, j: (0, j)),   # W2 H-slab
                pl.BlockSpec((1, th_eff), lambda i, j: (0, j)),        # b2 slice
                pl.BlockSpec((th_eff, d_out_p), lambda i, j: (j, 0)),  # W3 H-slab
                pl.BlockSpec((1, d_out_p), lambda i, j: (0, 0)),       # b3
            ],
            out_specs=pl.BlockSpec((tm_eff, d_out_p), lambda i, j: (i, 0)),
            scratch_shapes=[pltpu.VMEM((tm_eff, d_out_p), jnp.float32)],
        ),
        compiler_params=pltpu.CompilerParams(
            dimension_semantics=("parallel", "arbitrary"),
            vmem_limit_bytes=vmem_limit_bytes,
        ),
    )(x2d_p, w1_p, b1_p, w2_p, b2_p, w3_p, b3_p)

    return out2d[:M, :D_out].reshape(B, N, D_out)


def swiglu_reference(x, w1, b1, w2, b2, w3, b3):
    h1 = jnp.einsum("bnd,dh->bnh", x, w1) + b1[0]
    h2 = jnp.einsum("bnd,dh->bnh", x, w2) + b2[0]
    hidden = jax.nn.silu(h1) * h2
    return jnp.einsum("bnh,ho->bno", hidden, w3) + b3[0]


if __name__ == "__main__":
    # Small shapes consistent with the module: tokens of dim in_features.
    B, N = 2, 8
    in_features = 32
    hidden_features = 64
    out_features = in_features

    key = jax.random.PRNGKey(0)
    kx, k1, kb1, k2, kb2, k3, kb3 = jax.random.split(key, 7)

    x = jax.random.normal(kx, (B, N, in_features), dtype=jnp.float32)
    # PyTorch nn.Linear stores (out, in); here weights are already transposed
    # to (in, out) for the kernel.
    w1 = 0.05 * jax.random.normal(k1, (in_features, hidden_features), dtype=jnp.float32)
    b1 = 0.01 * jax.random.normal(kb1, (1, hidden_features), dtype=jnp.float32)
    w2 = 0.05 * jax.random.normal(k2, (in_features, hidden_features), dtype=jnp.float32)
    b2 = 0.01 * jax.random.normal(kb2, (1, hidden_features), dtype=jnp.float32)
    w3 = 0.05 * jax.random.normal(k3, (hidden_features, out_features), dtype=jnp.float32)
    b3 = 0.01 * jax.random.normal(kb3, (1, out_features), dtype=jnp.float32)

    # Demo uses f32 compute so the result matches the f32 reference tightly;
    # pass compute_dtype=jnp.bfloat16 for production speed on v6e/v7x.
    out = swiglu_pallas(x, w1, b1, w2, b2, w3, b3)
    out = jax.block_until_ready(out)

    ref = swiglu_reference(x, w1, b1, w2, b2, w3, b3)
    assert out.shape == (B, N, out_features)
    assert jnp.allclose(out, ref, atol=1e-4, rtol=1e-4), (
        float(jnp.max(jnp.abs(out - ref))))

    print("KERNEL_OK")
</pallas_src>

<mosaic_0001>
module attributes {stable_mosaic.version = 11 : i64} {
  func.func @swiglu_kernel(%arg0: i32, %arg1: i32, %arg2: memref<16x128xf32, #tpu.memory_space<vmem>>, %arg3: memref<128x128xf32, #tpu.memory_space<vmem>>, %arg4: memref<1x128xf32, #tpu.memory_space<vmem>>, %arg5: memref<128x128xf32, #tpu.memory_space<vmem>>, %arg6: memref<1x128xf32, #tpu.memory_space<vmem>>, %arg7: memref<128x128xf32, #tpu.memory_space<vmem>>, %arg8: memref<1x128xf32, #tpu.memory_space<vmem>>, %arg9: memref<16x128xf32, #tpu.memory_space<vmem>>, %arg10: memref<16x128xf32, #tpu.memory_space<vmem>>) attributes {dimension_semantics = [#tpu.dimension_semantics<parallel>, #tpu.dimension_semantics<arbitrary>], iteration_bounds = array<i64: 1, 1>, scalar_prefetch = 0 : i64, scratch_operands = 1 : i64, tpu.core_type = #tpu.core_type<tc>, window_params = [{transform_indices = @transform_0, window_bounds = array<i64: 16, 128>}, {transform_indices = @transform_1, window_bounds = array<i64: 128, 128>}, {transform_indices = @transform_2, window_bounds = array<i64: 1, 128>}, {transform_indices = @transform_3, window_bounds = array<i64: 128, 128>}, {transform_indices = @transform_4, window_bounds = array<i64: 1, 128>}, {transform_indices = @transform_5, window_bounds = array<i64: 128, 128>}, {pipeline_mode = #tpu.pipeline_mode<synchronous>, transform_indices = @transform_6, window_bounds = array<i64: 1, 128>}, {transform_indices = @transform_7, window_bounds = array<i64: 16, 128>}]} {
    %c0_i32 = arith.constant 0 : i32
    %0 = arith.cmpi eq, %arg1, %c0_i32 : i32
    %1 = arith.extui %0 : i1 to i32
    %c0_i32_0 = arith.constant 0 : i32
    %2 = arith.cmpi ne, %1, %c0_i32_0 : i32
    scf.if %2 {
      %cst_21 = arith.constant 0.000000e+00 : f32
      %29 = vector.broadcast %cst_21 : f32 to vector<16x128xf32>
      %c0_22 = arith.constant 0 : index
      %c0_23 = arith.constant 0 : index
      %30 = vector.load %arg10[%c0_22, %c0_23] : memref<16x128xf32, #tpu.memory_space<vmem>>, vector<16x128xf32>
      tpu.vector_store %arg10[%c0_22, %c0_23], %29 {strides = array<i32>} : memref<16x128xf32, #tpu.memory_space<vmem>>, vector<16x128xf32>,
    } else {
    }
    %c0 = arith.constant 0 : index
    %c0_1 = arith.constant 0 : index
    %3 = vector.load %arg2[%c0, %c0_1] : memref<16x128xf32, #tpu.memory_space<vmem>>, vector<16x128xf32>
    %c0_2 = arith.constant 0 : index
    %c0_3 = arith.constant 0 : index
    %4 = vector.load %arg3[%c0_2, %c0_3] : memref<128x128xf32, #tpu.memory_space<vmem>>, vector<128x128xf32>
    %cst = arith.constant dense<0.000000e+00> : vector<16x128xf32>
    %5 = tpu.matmul %3, %4, %cst {dimension_numbers = #tpu.dot_dimension_numbers<[1], [0], [0], [1], [0, 0, 1, 1], [], []>} : vector<16x128xf32>, vector<128x128xf32>, vector<16x128xf32> -> vector<16x128xf32>
    %c0_4 = arith.constant 0 : index
    %c0_5 = arith.constant 0 : index
    %6 = vector.load %arg4[%c0_4, %c0_5] : memref<1x128xf32, #tpu.memory_space<vmem>>, vector<1x128xf32>
    %7 = vector.broadcast %6 : vector<1x128xf32> to vector<16x128xf32>
    %8 = arith.addf %5, %7 : vector<16x128xf32>
    %c0_6 = arith.constant 0 : index
    %c0_7 = arith.constant 0 : index
    %9 = vector.load %arg5[%c0_6, %c0_7] : memref<128x128xf32, #tpu.memory_space<vmem>>, vector<128x128xf32>
    %cst_8 = arith.constant dense<0.000000e+00> : vector<16x128xf32>
    %10 = tpu.matmul %3, %9, %cst_8 {dimension_numbers = #tpu.dot_dimension_numbers<[1], [0], [0], [1], [0, 0, 1, 1], [], []>} : vector<16x128xf32>, vector<128x128xf32>, vector<16x128xf32> -> vector<16x128xf32>
    %c0_9 = arith.constant 0 : index
    %c0_10 = arith.constant 0 : index
    %11 = vector.load %arg6[%c0_9, %c0_10] : memref<1x128xf32, #tpu.memory_space<vmem>>, vector<1x128xf32>
    %12 = vector.broadcast %11 : vector<1x128xf32> to vector<16x128xf32>
    %13 = arith.addf %10, %12 : vector<16x128xf32>
    %14 = arith.negf %8 : vector<16x128xf32>
    %15 = math.exp %14 : vector<16x128xf32>
    %cst_11 = arith.constant 1.000000e+00 : f32
    %16 = vector.broadcast %cst_11 : f32 to vector<16x128xf32>
    %17 = arith.addf %16, %15 : vector<16x128xf32>
    %18 = arith.divf %16, %17 : vector<16x128xf32>
    %19 = arith.mulf %8, %18 : vector<16x128xf32>
    %20 = arith.mulf %19, %13 : vector<16x128xf32>
    %c0_12 = arith.constant 0 : index
    %c0_13 = arith.constant 0 : index
    %21 = vector.load %arg10[%c0_12, %c0_13] : memref<16x128xf32, #tpu.memory_space<vmem>>, vector<16x128xf32>
    %c0_14 = arith.constant 0 : index
    %c0_15 = arith.constant 0 : index
    %22 = vector.load %arg7[%c0_14, %c0_15] : memref<128x128xf32, #tpu.memory_space<vmem>>, vector<128x128xf32>
    %cst_16 = arith.constant dense<0.000000e+00> : vector<16x128xf32>
    %23 = tpu.matmul %20, %22, %cst_16 {dimension_numbers = #tpu.dot_dimension_numbers<[1], [0], [0], [1], [0, 0, 1, 1], [], []>} : vector<16x128xf32>, vector<128x128xf32>, vector<16x128xf32> -> vector<16x128xf32>
    %24 = arith.addf %21, %23 : vector<16x128xf32>
    %c0_17 = arith.constant 0 : index
    %c0_18 = arith.constant 0 : index
    %25 = vector.load %arg10[%c0_17, %c0_18] : memref<16x128xf32, #tpu.memory_space<vmem>>, vector<16x128xf32>
    tpu.vector_store %arg10[%c0_17, %c0_18], %24 {strides = array<i32>} : memref<16x128xf32, #tpu.memory_space<vmem>>, vector<16x128xf32>,
    %c0_i32_19 = arith.constant 0 : i32
    %26 = arith.cmpi eq, %arg1, %c0_i32_19 : i32
    %27 = arith.extui %26 : i1 to i32
    %c0_i32_20 = arith.constant 0 : i32
    %28 = arith.cmpi ne, %27, %c0_i32_20 : i32
    scf.if %28 {
      %c0_21 = arith.constant 0 : index
      %c0_22 = arith.constant 0 : index
      %29 = vector.load %arg10[%c0_21, %c0_22] : memref<16x128xf32, #tpu.memory_space<vmem>>, vector<16x128xf32>
      %c0_23 = arith.constant 0 : index
      %c0_24 = arith.constant 0 : index
      %30 = vector.load %arg8[%c0_23, %c0_24] : memref<1x128xf32, #tpu.memory_space<vmem>>, vector<1x128xf32>
      %31 = vector.broadcast %30 : vector<1x128xf32> to vector<16x128xf32>
      %32 = arith.addf %29, %31 : vector<16x128xf32>
      %c0_25 = arith.constant 0 : index
      %c0_26 = arith.constant 0 : index
      %33 = vector.load %arg9[%c0_25, %c0_26] : memref<16x128xf32, #tpu.memory_space<vmem>>, vector<16x128xf32>
      tpu.vector_store %arg9[%c0_25, %c0_26], %32 {strides = array<i32>} : memref<16x128xf32, #tpu.memory_space<vmem>>, vector<16x128xf32>,
    } else {
    }
    return
  }
  func.func @transform_0(%arg0: i32, %arg1: i32) -> (i32, i32) {
    %c0_i32 = arith.constant 0 : i32
    %c0_i32_0 = arith.constant 0 : i32
    return %arg0, %c0_i32 : i32, i32
  }
  func.func @transform_1(%arg0: i32, %arg1: i32) -> (i32, i32) {
    %c0_i32 = arith.constant 0 : i32
    %c0_i32_0 = arith.constant 0 : i32
    return %c0_i32, %arg1 : i32, i32
  }
  func.func @transform_2(%arg0: i32, %arg1: i32) -> (i32, i32) {
    %c0_i32 = arith.constant 0 : i32
    %c0_i32_0 = arith.constant 0 : i32
    return %c0_i32, %arg1 : i32, i32
  }
  func.func @transform_3(%arg0: i32, %arg1: i32) -> (i32, i32) {
    %c0_i32 = arith.constant 0 : i32
    %c0_i32_0 = arith.constant 0 : i32
    return %c0_i32, %arg1 : i32, i32
  }
  func.func @transform_4(%arg0: i32, %arg1: i32) -> (i32, i32) {
    %c0_i32 = arith.constant 0 : i32
    %c0_i32_0 = arith.constant 0 : i32
    return %c0_i32, %arg1 : i32, i32
  }
  func.func @transform_5(%arg0: i32, %arg1: i32) -> (i32, i32) {
    %c0_i32 = arith.constant 0 : i32
    %c0_i32_0 = arith.constant 0 : i32
    return %arg1, %c0_i32 : i32, i32
  }
  func.func @transform_6(%arg0: i32, %arg1: i32) -> (i32, i32) {
    %c0_i32 = arith.constant 0 : i32
    %c0_i32_0 = arith.constant 0 : i32
    %c0_i32_1 = arith.constant 0 : i32
    return %c0_i32, %c0_i32_0 : i32, i32
  }
  func.func @transform_7(%arg0: i32, %arg1: i32) -> (i32, i32) {
    %c0_i32 = arith.constant 0 : i32
    %c0_i32_0 = arith.constant 0 : i32
    return %arg0, %c0_i32 : i32, i32
  }
}

</mosaic_0001>

<bundles_post_ra>
// kernel: swiglu_pallas.1
= control target key start
LH: loop header
LB: loop body
LE: loop exit
PB: predicated region body
PF: predicated region fallthrough
CT: control target
= control target key end

     0   :  { %12 = vsyncpa [#allocation4], 0  ;;  %s1108_s0 = inlined_call_operand.hbm [shape: f32[16,128], index: 0, kind: input, shape index: {}]   ;;  %s1109_s1 = inlined_call_operand.hbm [shape: f32[128,128], index: 1, kind: input, shape index: {}]   ;;  %s1110_s2 = inlined_call_operand.hbm [shape: f32[1,128], index: 2, kind: input, shape index: {}]   ;;  %s1111_s3 = inlined_call_operand.hbm [shape: f32[128,128], index: 3, kind: input, shape index: {}]   ;;  %s1112_s4 = inlined_call_operand.hbm [shape: f32[1,128], index: 4, kind: input, shape index: {}]   ;;  %s1113_s5 = inlined_call_operand.hbm [shape: f32[128,128], index: 5, kind: input, shape index: {}]   ;;  %s1114_s6 = inlined_call_operand.hbm [shape: f32[1,128], index: 6, kind: input, shape index: {}]   ;;  %s1115_s7 = inlined_call_operand.hbm [shape: f32[16,128], index: 7, kind: output, shape index: {}]  }
   0x1   :  { %13 = vsyncpa [#allocation7], 0 }
   0x2   :  { %14 = vsyncpa [#allocation10], 0 }
   0x3   :  { %15 = vsyncpa [#allocation13], 0 }
   0x4   :  { %16 = vsyncpa [#allocation5], 0  ;;  %s933_s24 = smov [#allocation6]   ;;  %s934_s26 = smov [#allocation9]  }
   0x5   :  { %s34_s25 = sshll.u32 %s933_s24, 4  ;;  %s56_s27 = sshll.u32 %s934_s26, 4  ;;  %s35_s25 = int_to_ptr.vmem [resolvable:$true] %s34_s25  ;;  %s983_s27 = int_to_ptr.vmem [resolvable:$true] %s56_s27 }
   0x6   :  { %s747_s30 = scalar_lea.hbm %s1109_s1, 2048 }
   0x7   :  { %p748_p0 = scmp.ne.s32.totalorder %s1109_s1, %s747_s30  ;;  %p751_p1 = scmp.lt.u32.totalorder %s747_s30, %s1109_s1 }
   0x9   :  { %p753_p2 = pnand %p751_p1, %p748_p0 }
   0xb   :  { %756 = shalt.err (!%p753_p2)
}
   0xc   :  { %s757_s12 = scalar_lea.vmem %s35_s25, 2048  ;;  %p762_p4 = scmp.lt.s32.totalorder %s35_s25, %s35_s25 }
   0xd   :  { %p758_p3 = scmp.ne.s32.totalorder %s35_s25, %s757_s12  ;;  %p763_p5 = scmp.lt.s32.totalorder %s757_s12, %s757_s12 }
   0xf   :  { %p764_p6 = por %p763_p5, %p762_p4 }
  0x11   :  { %p765_p7 = pnand %p764_p6, %p758_p3 }
  0x13   :  { %768 = shalt.err (!%p765_p7)
}
  0x14   :  { %s935_s13 = smov 128   ;;  %s936_s14 = smov 8  }
  0x15   :  { %40 = dma.hbm_to_vmem [thread:$0]  %s1109_s1, 2048, %s35_s25, [#allocation7], %s935_s13, %s935_s13, %s936_s14  }
  0x16   :  { %s769_s19 = scalar_lea.hbm %s1111_s3, 2048 }
  0x17   :  { %p770_p8 = scmp.ne.s32.totalorder %s1111_s3, %s769_s19  ;;  %p773_p9 = scmp.lt.u32.totalorder %s769_s19, %s1111_s3 }
  0x19   :  { %p775_p10 = pnand %p773_p9, %p770_p8 }
  0x1b   :  { %778 = shalt.err (!%p775_p10)
}
  0x1c   :  { %s779_s24 = scalar_lea.vmem %s983_s27, 2048  ;;  %p784_p12 = scmp.lt.s32.totalorder %s983_s27, %s983_s27 }
  0x1d   :  { %p780_p11 = scmp.ne.s32.totalorder %s983_s27, %s779_s24  ;;  %p785_p13 = scmp.lt.s32.totalorder %s779_s24, %s779_s24 }
  0x1f   :  { %p786_p0 = por %p785_p13, %p784_p12 }
  0x21   :  { %p787_p1 = pnand %p786_p0, %p780_p11 }
  0x23   :  { %790 = shalt.err (!%p787_p1)
}
  0x24   :  { %62 = dma.hbm_to_vmem [thread:$0]  %s1111_s3, 2048, %s983_s27, [#allocation10], %s935_s13, %s935_s13, %s936_s14  }
  0x25   :  { %s937_s26 = smov [#allocation12]   ;;  %s938_s29 = smov [#allocation3]  }
  0x26   :  { %s78_s28 = sshll.u32 %s937_s26, 4  ;;  %s22_s30 = sshll.u32 %s938_s29, 4  ;;  %s79_s28 = int_to_ptr.vmem [resolvable:$true] %s78_s28  ;;  %s1020_s30 = int_to_ptr.vmem [resolvable:$true] %s22_s30 }
  0x27   :  { %s791_s10 = scalar_lea.hbm %s1113_s5, 2048 }
  0x28   :  { %p792_p2 = scmp.ne.s32.totalorder %s1113_s5, %s791_s10  ;;  %p795_p3 = scmp.lt.u32.totalorder %s791_s10, %s1113_s5 }
  0x2a   :  { %p797_p4 = pnand %p795_p3, %p792_p2 }
  0x2c   :  { %800 = shalt.err (!%p797_p4)
}
  0x2d   :  { %s801_s3 = scalar_lea.vmem %s79_s28, 2048  ;;  %p806_p6 = scmp.lt.s32.totalorder %s79_s28, %s79_s28 }
  0x2e   :  { %p802_p5 = scmp.ne.s32.totalorder %s79_s28, %s801_s3  ;;  %p807_p7 = scmp.lt.s32.totalorder %s801_s3, %s801_s3 }
  0x30   :  { %p808_p8 = por %p807_p7, %p806_p6 }
  0x32   :  { %p809_p9 = pnand %p808_p8, %p802_p5 }
  0x34   :  { %812 = shalt.err (!%p809_p9)
}
  0x35   :  { %84 = dma.hbm_to_vmem [thread:$0]  %s1113_s5, 2048, %s79_s28, [#allocation13], %s935_s13, %s935_s13, %s936_s14  }
  0x36   :  { %s813_s20 = scalar_lea.hbm %s1108_s0, 256 }
  0x37   :  { %p814_p10 = scmp.ne.s32.totalorder %s1108_s0, %s813_s20  ;;  %p817_p11 = scmp.lt.u32.totalorder %s813_s20, %s1108_s0 }
  0x39   :  { %p819_p12 = pnand %p817_p11, %p814_p10 }
  0x3b   :  { %822 = shalt.err (!%p819_p12)
}
  0x3c   :  { %s823_s1 = scalar_lea.vmem %s1020_s30, 256  ;;  %p828_p0 = scmp.lt.s32.totalorder %s1020_s30, %s1020_s30 }
  0x3d   :  { %p824_p13 = scmp.ne.s32.totalorder %s1020_s30, %s823_s1  ;;  %p829_p1 = scmp.lt.s32.totalorder %s823_s1, %s823_s1 }
  0x3f   :  { %p830_p2 = por %p829_p1, %p828_p0 }
  0x41   :  { %p831_p3 = pnand %p830_p2, %p824_p13 }
  0x43   :  { %834 = shalt.err (!%p831_p3)
}
  0x44   :  { %28 = dma.hbm_to_vmem [thread:$0]  %s1108_s0, 256, %s1020_s30, [#allocation4], %s935_s13, %s935_s13, %s936_s14  }
  0x45   :  { %s939_s26 = smov [#allocation8]   ;;  %s940_s29 = smov [#allocation11]  }
  0x46   :  { %s47_s28 = sshll.u32 %s939_s26, 4  ;;  %s69_s8 = sshll.u32 %s940_s29, 4  ;;  %s48_s28 = int_to_ptr.vmem [resolvable:$true] %s47_s28  ;;  %s70_s8 = int_to_ptr.vmem [resolvable:$true] %s69_s8 }
  0x47   :  { %s835_s11 = scalar_lea.hbm %s1110_s2, 16 }
  0x48   :  { %p836_p4 = scmp.ne.s32.totalorder %s1110_s2, %s835_s11  ;;  %p839_p5 = scmp.lt.u32.totalorder %s835_s11, %s1110_s2 }
  0x4a   :  { %p841_p6 = pnand %p839_p5, %p836_p4 }
  0x4c   :  { %844 = shalt.err (!%p841_p6)
}
  0x4d   :  { %s845_s0 = scalar_lea.vmem %s48_s28, 16  ;;  %s849_s30 = scalar_lea.vmem %s48_s28, 32 }
  0x4e   :  { %p846_p7 = scmp.ne.s32.totalorder %s48_s28, %s845_s0  ;;  %p850_p8 = scmp.lt.s32.totalorder %s48_s28, %s48_s28 }
  0x4f   :  { %p851_p9 = scmp.lt.s32.totalorder %s849_s30, %s845_s0 }
  0x51   :  { %p852_p10 = por %p851_p9, %p850_p8 }
  0x53   :  { %p853_p11 = pnand %p852_p10, %p846_p7 }
  0x55   :  { %856 = shalt.err (!%p853_p11)
}
  0x56   :  { %50 = dma.hbm_to_vmem [thread:$0]  %s1110_s2, 16, %s48_s28, [#allocation7]  }
  0x57   :  { %s857_s20 = scalar_lea.hbm %s1112_s4, 16 }
  0x58   :  { %p858_p12 = scmp.ne.s32.totalorder %s1112_s4, %s857_s20  ;;  %p861_p13 = scmp.lt.u32.totalorder %s857_s20, %s1112_s4 }
  0x5a   :  { %p863_p0 = pnand %p861_p13, %p858_p12 }
  0x5c   :  { %866 = shalt.err (!%p863_p0)
}
  0x5d   :  { %s867_s1 = scalar_lea.vmem %s70_s8, 16  ;;  %s871_s5 = scalar_lea.vmem %s70_s8, 32 }
  0x5e   :  { %p868_p1 = scmp.ne.s32.totalorder %s70_s8, %s867_s1  ;;  %p872_p2 = scmp.lt.s32.totalorder %s70_s8, %s70_s8 }
  0x5f   :  { %p873_p3 = scmp.lt.s32.totalorder %s871_s5, %s867_s1 }
  0x61   :  { %p874_p4 = por %p873_p3, %p872_p2 }
  0x63   :  { %p875_p5 = pnand %p874_p4, %p868_p1 }
  0x65   :  { %878 = shalt.err (!%p875_p5)
}
  0x66   :  { %72 = dma.hbm_to_vmem [thread:$0]  %s1112_s4, 16, %s70_s8, [#allocation10]  }
  0x67   :  { %s941_s26 = smov [#allocation14]   ;;  %s879_s10 = scalar_lea.hbm %s1114_s6, 16 }
  0x68   :  { %s91_s28 = sshll.u32 %s941_s26, 4  ;;  %p880_p6 = scmp.ne.s32.totalorder %s1114_s6, %s879_s10  ;;  %s92_s28 = int_to_ptr.vmem [resolvable:$true] %s91_s28 }
  0x69   :  { %p883_p7 = scmp.lt.u32.totalorder %s879_s10, %s1114_s6 }
  0x6b   :  { %p885_p8 = pnand %p883_p7, %p880_p6 }
  0x6d   :  { %888 = shalt.err (!%p885_p8)
}
  0x6e   :  { %s889_s3 = scalar_lea.vmem %s92_s28, 16  ;;  %s893_s4 = scalar_lea.vmem %s92_s28, 32 }
  0x6f   :  { %p890_p9 = scmp.ne.s32.totalorder %s92_s28, %s889_s3  ;;  %p894_p10 = scmp.lt.s32.totalorder %s92_s28, %s92_s28 }
  0x70   :  { %p895_p11 = scmp.lt.s32.totalorder %s893_s4, %s889_s3 }
  0x72   :  { %p896_p12 = por %p895_p11, %p894_p10 }
  0x74   :  { %p897_p13 = pnand %p896_p12, %p890_p9 }
  0x76   :  { %900 = shalt.err (!%p897_p13)
}
  0x77   :  { %94 = dma.hbm_to_vmem [thread:$0]  %s1114_s6, 16, %s92_s28, [#allocation13]  }
  0x78   :  { %923 = dma.done.wait [#allocation4], 256  }
  0x79   :  { %924 = vsyncadd [#allocation4], 4294967040 }
  0x7a   :  { %925 = dma.done.wait [#allocation7], 2064  }
  0x7b   :  { %926 = vsyncadd [#allocation7], 4294965232 }
  0x7c   :  { %927 = dma.done.wait [#allocation10], 2064  }
  0x7d   :  { %928 = vsyncadd [#allocation10], 4294965232 }
  0x7e   :  { %929 = dma.done.wait [#allocation13], 2064  }
  0x7f   :  { %930 = vsyncadd [#allocation13], 4294965232  ;;  %v124_v0 = vld [vmem:[#allocation6] sm:$0xff]  ;;  %v125_v1 = vld [vmem:[#allocation6 + $0x8] sm:$0xff]  ;;  %s942_s6 = smov [#allocation15]  }
  0x80   :  { %v126_v2 = vld [vmem:[#allocation6 + $0x10] sm:$0xff]  ;;  %v633_v3 = vpack.c.bf16 %v125_v1, %v124_v0  ;;  %v127_v4 = vld [vmem:[#allocation6 + $0x18] sm:$0xff]  ;;  %v128_v6 = vld [vmem:[#allocation6 + $0x20] sm:$0xff]  ;;  %s454_s30 = sshll.u32 %s942_s6, 4  ;;  %s455_s30 = int_to_ptr.vmem [resolvable:$true] %s454_s30 }
  0x81   :  { %v637_v5 = vpack.c.bf16 %v127_v4, %v126_v2  ;;  %v129_v7 = vld [vmem:[#allocation6 + $0x28] sm:$0xff]  ;;  %v130_v10 = vld [vmem:[#allocation6 + $0x30] sm:$0xff]  ;;  %v131_v11 = vld [vmem:[#allocation6 + $0x38] sm:$0xff]  ;;  %s901_s27 = scalar_lea.vmem %s455_s30, 256  ;;  %p906_p1 = scmp.lt.s32.totalorder %s455_s30, %s455_s30 }
  0x82   :  { %634 = vmatprep.subr.bf16.mxu0 %v633_v3  ;;  %v222_v8 = vld [vmem:[#allocation9] sm:$0xff]  ;;  %v641_v9 = vpack.c.bf16 %v129_v7, %v128_v6  ;;  %v223_v12 = vld [vmem:[#allocation9 + $0x8] sm:$0xff]  ;;  %v224_v15 = vld [vmem:[#allocation9 + $0x10] sm:$0xff]  ;;  %v645_v20 = vpack.c.bf16 %v131_v11, %v130_v10  ;;  %p902_p0 = scmp.ne.s32.totalorder %s455_s30, %s901_s27  ;;  %p907_p2 = scmp.lt.s32.totalorder %s901_s27, %s901_s27 }
  0x83   :  { %636 = vmatpush3.bf16.msra.mxu0 %v633_v3  ;;  %v665_v13 = vpack.c.bf16 %v223_v12, %v222_v8  ;;  %v122_v14 = vld [vmem:[#allocation3] sm:$0xff]  ;;  %v225_v16 = vld [vmem:[#allocation9 + $0x18] sm:$0xff]  ;;  %v226_v18 = vld [vmem:[#allocation9 + $0x20] sm:$0xff] }
  0x84   :  { %638 = vmatprep.subr.bf16.mxu0 %v637_v5  ;;  %560 = vmatprep.mubr.f32.mxu0 %v122_v14  ;;  %v669_v17 = vpack.c.bf16 %v225_v16, %v224_v15  ;;  %v227_v19 = vld [vmem:[#allocation9 + $0x28] sm:$0xff]  ;;  %v132_v21 = vld [vmem:[#allocation6 + $0x40] sm:$0xff]  ;;  %v228_v24 = vld [vmem:[#allocation9 + $0x30] sm:$0xff]  ;;  %p908_p3 = por %p907_p2, %p906_p1 }
  0x85   :  { %595 = vmatprep.mubr.f32.mxu1 %v122_v14  ;;  %666 = vmatprep.subr.bf16.mxu1 %v665_v13  ;;  %v133_v22 = vld [vmem:[#allocation6 + $0x48] sm:$0xff]  ;;  %v673_v23 = vpack.c.bf16 %v227_v19, %v226_v18  ;;  %v229_v25 = vld [vmem:[#allocation9 + $0x38] sm:$0xff]  ;;  %v134_v27 = vld [vmem:[#allocation6 + $0x50] sm:$0xff] }
  0x86   :  { %668 = vmatpush3.bf16.msra.mxu1 %v665_v13  ;;  %v649_v26 = vpack.c.bf16 %v133_v22, %v132_v21  ;;  %v135_v28 = vld [vmem:[#allocation6 + $0x58] sm:$0xff]  ;;  %v677_v29 = vpack.c.bf16 %v229_v25, %v228_v24  ;;  %v230_v30 = vld [vmem:[#allocation9 + $0x40] sm:$0xff]  ;;  %v231_v31 = vld [vmem:[#allocation9 + $0x48] sm:$0xff]  ;;  %p909_p4 = pnand %p908_p3, %p902_p0 }
  0x87   :  { %640 = vmatpush3.bf16.msra.mxu0 %v637_v5  ;;  %670 = vmatprep.subr.bf16.mxu1 %v669_v17  ;;  %v653_v32 = vpack.c.bf16 %v135_v28, %v134_v27  ;;  %v136_v33 = vld [vmem:[#allocation6 + $0x60] sm:$0xff]  ;;  %v137_v34 = vld [vmem:[#allocation6 + $0x68] sm:$0xff]  ;;  %v681_v35 = vpack.c.bf16 %v231_v31, %v230_v30  ;;  %v232_v36 = vld [vmem:[#allocation9 + $0x50] sm:$0xff] }
  0x88   :  { %642 = vmatprep.subr.bf16.mxu0 %v641_v9  ;;  %v233_v37 = vld [vmem:[#allocation9 + $0x58] sm:$0xff]  ;;  %v657_v38 = vpack.c.bf16 %v137_v34, %v136_v33  ;;  %v138_v39 = vld [vmem:[#allocation6 + $0x70] sm:$0xff]  ;;  %v234_v42 = vld [vmem:[#allocation9 + $0x60] sm:$0xff] }
  0x89   :  { %v139_v40 = vld [vmem:[#allocation6 + $0x78] sm:$0xff]  ;;  %v685_v41 = vpack.c.bf16 %v233_v37, %v232_v36  ;;  %v235_v43 = vld [vmem:[#allocation9 + $0x68] sm:$0xff]  ;;  %v469_v10 = vld [vmem:[#allocation8] ss:$0 sm:$0xff] }
  0x8a   :  { %672 = vmatpush3.bf16.msra.mxu1 %v669_v17  ;;  %v661_v44 = vpack.c.bf16 %v139_v40, %v138_v39  ;;  %v689_v45 = vpack.c.bf16 %v235_v43, %v234_v42  ;;  %v236_v46 = vld [vmem:[#allocation9 + $0x70] sm:$0xff]  ;;  %v237_v47 = vld [vmem:[#allocation9 + $0x78] sm:$0xff]  ;;  %v338_v50 = vld [vmem:[#allocation12] sm:$0xff] }
  0x8b   :  { %644 = vmatpush3.bf16.msra.mxu0 %v641_v9  ;;  %674 = vmatprep.subr.bf16.mxu1 %v673_v23  ;;  %v693_v48 = vpack.c.bf16 %v237_v47, %v236_v46  ;;  %v123_v49 = vld [vmem:[#allocation3 + $0x8] sm:$0xff]  ;;  %v339_v51 = vld [vmem:[#allocation12 + $0x8] sm:$0xff]  ;;  %v342_v56 = vld [vmem:[#allocation12 + $0x20] sm:$0xff] }
  0x8c   :  { %646 = vmatprep.subr.bf16.mxu0 %v645_v20  ;;  %v697_v52 = vpack.c.bf16 %v339_v51, %v338_v50  ;;  %v340_v53 = vld [vmem:[#allocation12 + $0x10] sm:$0xff]  ;;  %v341_v54 = vld [vmem:[#allocation12 + $0x18] sm:$0xff]  ;;  %v343_v57 = vld [vmem:[#allocation12 + $0x28] sm:$0xff] }
  0x8d   :  { %v701_v55 = vpack.c.bf16 %v341_v54, %v340_v53  ;;  %v705_v58 = vpack.c.bf16 %v343_v57, %v342_v56  ;;  %v344_v59 = vld [vmem:[#allocation12 + $0x30] sm:$0xff]  ;;  %v345_v60 = vld [vmem:[#allocation12 + $0x38] sm:$0xff]  ;;  %v346_v62 = vld [vmem:[#allocation12 + $0x40] sm:$0xff] }
  0x8e   :  { %676 = vmatpush3.bf16.msra.mxu1 %v673_v23  ;;  %v709_v61 = vpack.c.bf16 %v345_v60, %v344_v59  ;;  %v347_v63 = vld [vmem:[#allocation12 + $0x48] sm:$0xff]  ;;  %v348_v1 = vld [vmem:[#allocation12 + $0x50] sm:$0xff]  ;;  %v349_v2 = vld [vmem:[#allocation12 + $0x58] sm:$0xff] }
  0x8f   :  { %648 = vmatpush3.bf16.msra.mxu0 %v645_v20  ;;  %678 = vmatprep.subr.bf16.mxu1 %v677_v29  ;;  %v713_v0 = vpack.c.bf16 %v347_v63, %v346_v62  ;;  %v717_v3 = vpack.c.bf16 %v349_v2, %v348_v1  ;;  %v350_v4 = vld [vmem:[#allocation12 + $0x60] sm:$0xff]  ;;  %v351_v5 = vld [vmem:[#allocation12 + $0x68] sm:$0xff]  ;;  %v352_v7 = vld [vmem:[#allocation12 + $0x70] sm:$0xff] }
  0x90   :  { %650 = vmatprep.subr.bf16.mxu0 %v649_v26  ;;  %v721_v6 = vpack.c.bf16 %v351_v5, %v350_v4  ;;  %v353_v8 = vld [vmem:[#allocation12 + $0x78] sm:$0xff] }
  0x91   :  { %v725_v9 = vpack.c.bf16 %v353_v8, %v352_v7  ;;  %v470_v23 = vld [vmem:[#allocation11] ss:$0 sm:$0xff] }
  0x92   :  { %680 = vmatpush3.bf16.msra.mxu1 %v677_v29 }
  0x93   :  { %652 = vmatpush3.bf16.msra.mxu0 %v649_v26  ;;  %682 = vmatprep.subr.bf16.mxu1 %v681_v35 }
  0x94   :  { %654 = vmatprep.subr.bf16.mxu0 %v653_v32 }
  0x96   :  { %684 = vmatpush3.bf16.msra.mxu1 %v681_v35 }
  0x97   :  { %656 = vmatpush3.bf16.msra.mxu0 %v653_v32  ;;  %686 = vmatprep.subr.bf16.mxu1 %v685_v41  ;;  %v473_v32 = vld [vmem:[#allocation14] ss:$0 sm:$0xff] }
  0x98   :  { %658 = vmatprep.subr.bf16.mxu0 %v657_v38 }
  0x9a   :  { %688 = vmatpush3.bf16.msra.mxu1 %v685_v41 }
  0x9b   :  { %660 = vmatpush3.bf16.msra.mxu0 %v657_v38  ;;  %690 = vmatprep.subr.bf16.mxu1 %v689_v45 }
  0x9c   :  { %662 = vmatprep.subr.bf16.mxu0 %v661_v44 }
  0x9e   :  { %692 = vmatpush3.bf16.msra.mxu1 %v689_v45 }
  0x9f   :  { %664 = vmatpush3.bf16.msra.mxu0 %v661_v44  ;;  %694 = vmatprep.subr.bf16.mxu1 %v693_v48 }
  0xa0   :  { %698 = vmatprep.subr.bf16.mxu0 %v697_v52 }
  0xa2   :  { %561 = vmatmul.mubr.f32.vlgmr.msra.gmra.mrb[0].mxu0 %v123_v49  ;;  %696 = vmatpush3.bf16.msra.mxu1 %v693_v48 }
  0xa3   :  { %700 = vmatpush3.bf16.msra.mxu0 %v697_v52 }
  0xa4   :  { %702 = vmatprep.subr.bf16.mxu0 %v701_v55 }
  0xa5   :  { %596 = vmatmul.mubr.f32.vlgmr.msra.gmra.mrb[0].mxu1 %v123_v49 }
  0xa7   :  { %704 = vmatpush3.bf16.msra.mxu0 %v701_v55 }
  0xa8   :  { %706 = vmatprep.subr.bf16.mxu0 %v705_v58 }
  0xab   :  { %708 = vmatpush3.bf16.msra.mxu0 %v705_v58 }
  0xac   :  { %710 = vmatprep.subr.bf16.mxu0 %v709_v61 }
  0xaf   :  { %712 = vmatpush3.bf16.msra.mxu0 %v709_v61 }
  0xb0   :  { %714 = vmatprep.subr.bf16.mxu0 %v713_v0 }
  0xb3   :  { %716 = vmatpush3.bf16.msra.mxu0 %v713_v0 }
  0xb4   :  { %718 = vmatprep.subr.bf16.mxu0 %v717_v3 }
  0xb7   :  { %720 = vmatpush3.bf16.msra.mxu0 %v717_v3 }
  0xb8   :  { %722 = vmatprep.subr.bf16.mxu0 %v721_v6 }
  0xbb   :  { %724 = vmatpush3.bf16.msra.mxu0 %v721_v6 }
  0xbc   :  { %726 = vmatprep.subr.bf16.mxu0 %v725_v9 }
  0xbf   :  { %728 = vmatpush3.bf16.msra.mxu0 %v725_v9 }
 0x175   :  { %v562_v11 = vpop.f32.mrb[0].mxu0 }
 0x176   :  { %v219_v12 = vadd.f32 %v562_v11, %v469_v10  ;;  %v213_v13 = vpop.f32.mrb[1].mxu0 }
 0x177   :  { %v214_v14 = vadd.f32 %v469_v10, %v213_v13 }
 0x178   :  { %v472_v15 = vmul.f32 -1.442695, %v219_v12  ;;  %v597_v17 = vpop.f32.mrb[0].mxu1 }
 0x179   :  { %v471_v16 = vmul.f32 -1.442695, %v214_v14  ;;  %v311_v18 = vpop.f32.mrb[1].mxu1  ;;  %v317_v24 = vadd.f32 %v597_v17, %v470_v23 }
 0x17a   :  { %739 = vpow2.f32 %v472_v15  ;;  %v312_v26 = vadd.f32 %v470_v23, %v311_v18 }
 0x17b   :  { %741 = vpow2.f32 %v471_v16 }
 0x184   :  { %v740_v19 = vpop.eup %739 }
 0x185   :  { %v742_v20 = vpop.eup %741  ;;  %v327_v21 = vadd.f32 1.0, %v740_v19 }
 0x186   :  { %v326_v22 = vadd.f32 1.0, %v742_v20 }
 0x187   :  { %743 = vrcp.f32 %v327_v21 }
 0x188   :  { %745 = vrcp.f32 %v326_v22 }
 0x191   :  { %v744_v25 = vpop.eup %743 }
 0x192   :  { %v746_v27 = vpop.eup %745  ;;  %v333_v28 = vmul.f32 %v744_v25, %v219_v12 }
 0x193   :  { %v332_v29 = vmul.f32 %v746_v27, %v214_v14 }
 0x194   :  { %v335_v30 = vmul.f32 %v333_v28, %v317_v24 }
 0x195   :  { %v334_v31 = vmul.f32 %v332_v29, %v312_v26 }
 0x197   :  { %630 = vmatprep.mubr.f32.mxu0 %v334_v31 }
 0x198   :  { %631 = vmatmul.mubr.f32.vlgmr.msra.gmra.mrb[2].mxu0 %v335_v30 }
 0x26b   :  { %v632_v33 = vpop.f32.mrb[2].mxu0 }
 0x26c   :  { %v446_v34 = vadd.f32 %v632_v33, %v473_v32  ;;  %v420_v35 = vpop.f32.mrb[3].mxu0 }
 0x26d   :  { %v445_v36 = vadd.f32 %v473_v32, %v420_v35 }
 0x26e   :  { %448 = vst [vmem:[#allocation15 + $0x8] sm:$0xff] %v446_v34 }
 0x26f   :  { %447 = vst [vmem:[#allocation15] sm:$0xff] %v445_v36 }
 0x270   :  { %912 = shalt.err (!%p909_p4)
}
 0x271   :  { %s913_s19 = scalar_lea.hbm %s1115_s7, 256 }
 0x272   :  { %p914_p5 = scmp.ne.s32.totalorder %s1115_s7, %s913_s19  ;;  %p917_p6 = scmp.lt.u32.totalorder %s913_s19, %s1115_s7 }
 0x274   :  { %p919_p7 = pnand %p917_p6, %p914_p5 }
 0x276   :  { %922 = shalt.err (!%p919_p7)
}
 0x277   :  { %460 = dma.vmem_to_hbm [thread:$0]  %s455_s30, 256, %s1115_s7, [#allocation5], %s935_s13, %s935_s13, %s936_s14  }
 0x278   :  { %931 = dma.done.wait [#allocation5], 256  }
 0x279   :  { %932 = vsyncadd [#allocation5], 4294967040 }
 0x27a   :  { %464 = vsyncpa [#allocation4], 1 }
 0x27b   :  { %465 = vsyncpa [#allocation7], 1 }
 0x27c   :  { %466 = vsyncpa [#allocation10], 1 }
 0x27d   :  { %467 = vsyncpa [#allocation13], 1 }
 0x27e   :  { %468 = vsyncpa [#allocation5], 1 }

</bundles_post_ra>
